<compile_context>
chip_gen: v5e
topology: v5e:2x2
jax: 0.10.0
libtpu: 0.0.40
codegen_flags: <defaults>
</compile_context>

<pallas_src>
import functools

import jax
import jax.numpy as jnp
from jax import lax
from jax.experimental import pallas as pl
from jax.experimental.pallas import tpu as pltpu

EPS = 1e-5
_LANE = 128


def _round_up(x, m):
    return -(-x // m) * m


@functools.lru_cache(maxsize=None)
def _vmem_caps():
    """(tile budget, scoped-vmem limit) derived from the chip generation."""
    cap = 64 * 1024 * 1024                 # conservative fallback = v7x per-TC
    try:
        info = pltpu.get_tpu_info()
        for attr in ("vmem_capacity_bytes", "vmem_size_bytes", "vmem_bytes"):
            v = getattr(info, attr, None)
            if v:
                cap = int(v)
                break
    except Exception:
        pass
    limit = max(32 * 1024 * 1024, int(cap * 0.8))   # ~51 MiB v7x, ~102 MiB v5e/v6e
    budget = int(limit * 0.8)
    return budget, limit


# ---------------------------------------------------------------------------
# Pallas kernels: fused (patches @ w + bias [+ residual | + shortcut matmul]).
# BN scale is pre-folded into the weight columns; only a bias add remains.
# ---------------------------------------------------------------------------
def _mm_bias_kernel(p_ref, w_ref, b_ref, o_ref, *, relu):
    acc = jnp.dot(p_ref[...], w_ref[...], preferred_element_type=jnp.float32)
    acc = acc + b_ref[...]
    if relu:
        acc = jnp.maximum(acc, 0.0)
    o_ref[...] = acc.astype(o_ref.dtype)


def _mm_bias_res_kernel(p_ref, w_ref, b_ref, r_ref, o_ref, *, relu):
    acc = jnp.dot(p_ref[...], w_ref[...], preferred_element_type=jnp.float32)
    acc = acc + b_ref[...] + r_ref[...].astype(jnp.float32)
    if relu:
        acc = jnp.maximum(acc, 0.0)
    o_ref[...] = acc.astype(o_ref.dtype)


def _mm2_bias_kernel(p_ref, w_ref, sp_ref, sw_ref, b_ref, o_ref, *, relu):
    # conv2 matmul + fused 1x1 projection-shortcut matmul in the same tile.
    acc = jnp.dot(p_ref[...], w_ref[...], preferred_element_type=jnp.float32)
    acc = acc + jnp.dot(sp_ref[...], sw_ref[...],
                        preferred_element_type=jnp.float32)
    acc = acc + b_ref[...]
    if relu:
        acc = jnp.maximum(acc, 0.0)
    o_ref[...] = acc.astype(o_ref.dtype)


def _pad2d(a, rows, cols):
    r, c = a.shape
    if r == rows and c == cols:
        return a
    return jnp.pad(a, ((0, rows - r), (0, cols - c)))


def fused_conv_bn(patches, w_mat, bias, *, residual=None, sc_patches=None,
                  sc_w=None, relu=False, out_dtype=jnp.float32, tm_max=2048):
    """maybe_relu(patches @ w_mat + bias [+ residual] [+ sc_patches @ sc_w])."""
    M, K = patches.shape
    N = w_mat.shape[1]
    add_res = residual is not None
    add_sc = sc_patches is not None
    assert not (add_res and add_sc)

    budget, vmem_limit = _vmem_caps()

    # Lane-dense output columns; K padded to 128 only if overhead <= 12.5%.
    n_pad = _round_up(N, _LANE)
    k_aligned = _round_up(K, _LANE)
    k_pad = k_aligned if (k_aligned - K) * 8 <= K else K

    # tn = full padded width when it fits a single tile (<= 512 lanes): N grid
    # axis collapses to 1 so the patch stream is read exactly once.
    if n_pad <= 512:
        tn = n_pad
    else:
        tn = next(t for t in (512, 384, 256, 128) if n_pad % t == 0)

    kc = sc_patches.shape[1] if add_sc else 0
    out_bytes = jnp.dtype(out_dtype).itemsize

    def _vmem_need(tm_):
        per = (tm_ * k_pad * 2              # bf16 patch tile
               + k_pad * tn * 2             # bf16 weight tile
               + 8 * tn * 4                 # bias (sublane padded)
               + tm_ * tn * out_bytes)      # output tile
        if add_res:
            per += tm_ * tn * 2             # bf16 residual tile
        if add_sc:
            per += tm_ * max(kc, 8) * 2 + max(kc, 8) * tn * 2
        return 2 * per                      # double-buffered pipeline

    tm = min(tm_max, _round_up(M, 16))
    while tm > 16 and _vmem_need(tm) > budget:
        tm = max(16, _round_up(tm // 2, 16))
    # Prefer a tm that divides M exactly so padding the big streams is a no-op.
    if M % tm != 0 and M % 16 == 0:
        cand = tm
        while cand >= max(16, tm // 2):
            if M % cand == 0:
                tm = cand
                break
            cand -= 16
    m_pad = _round_up(M, tm)

    patches_p = _pad2d(patches.astype(jnp.bfloat16), m_pad, k_pad)
    w_p = _pad2d(w_mat.astype(jnp.bfloat16), k_pad, n_pad)
    bias_p = _pad2d(bias.reshape(1, N).astype(jnp.float32), 1, n_pad)

    grid = (n_pad // tn, m_pad // tm)                     # N outer, M inner
    p_spec = pl.BlockSpec((tm, k_pad), lambda ni, mi: (mi, 0))
    w_spec = pl.BlockSpec((k_pad, tn), lambda ni, mi: (0, ni))   # N-resident
    b_spec = pl.BlockSpec((1, tn), lambda ni, mi: (0, ni))
    o_spec = pl.BlockSpec((tm, tn), lambda ni, mi: (mi, ni))

    cp = pltpu.CompilerParams(
        dimension_semantics=("parallel", "parallel"),
        vmem_limit_bytes=vmem_limit)
    out_shape = jax.ShapeDtypeStruct((m_pad, n_pad), out_dtype)

    if add_sc:
        sp_p = _pad2d(sc_patches.astype(jnp.bfloat16), m_pad, kc)
        sw_p = _pad2d(sc_w.astype(jnp.bfloat16), kc, n_pad)
        sp_spec = pl.BlockSpec((tm, kc), lambda ni, mi: (mi, 0))
        sw_spec = pl.BlockSpec((kc, tn), lambda ni, mi: (0, ni))
        out = pl.pallas_call(
            functools.partial(_mm2_bias_kernel, relu=relu),
            out_shape=out_shape, grid=grid,
            in_specs=[p_spec, w_spec, sp_spec, sw_spec, b_spec],
            out_specs=o_spec, compiler_params=cp,
        )(patches_p, w_p, sp_p, sw_p, bias_p)
    elif add_res:
        r_p = _pad2d(residual.astype(jnp.bfloat16), m_pad, n_pad)   # bf16 stream
        r_spec = pl.BlockSpec((tm, tn), lambda ni, mi: (mi, ni))
        out = pl.pallas_call(
            functools.partial(_mm_bias_res_kernel, relu=relu),
            out_shape=out_shape, grid=grid,
            in_specs=[p_spec, w_spec, b_spec, r_spec],
            out_specs=o_spec, compiler_params=cp,
        )(patches_p, w_p, bias_p, r_p)
    else:
        out = pl.pallas_call(
            functools.partial(_mm_bias_kernel, relu=relu),
            out_shape=out_shape, grid=grid,
            in_specs=[p_spec, w_spec, b_spec],
            out_specs=o_spec, compiler_params=cp,
        )(patches_p, w_p, bias_p)

    return out[:M, :N]


# ---------------------------------------------------------------------------
# Plain-JAX glue: patch extraction, BN folding into the weight matrix.
# ---------------------------------------------------------------------------
def extract_patches(x_nhwc, kh, kw, stride, pad):
    """im2col rows (N*Ho*Wo, Cin*kh*kw), channel-major feature ordering:
       K index = c * (kh*kw) + i*kw + j  (matches conv_general_dilated_patches)."""
    n, h, w, c = x_nhwc.shape
    ho = (h + 2 * pad - kh) // stride + 1
    wo = (w + 2 * pad - kw) // stride + 1
    if kh == 1 and kw == 1 and pad == 0:
        p = x_nhwc[:, ::stride, ::stride, :]
    else:
        p = lax.conv_general_dilated_patches(
            x_nhwc, (kh, kw), (stride, stride),
            [(pad, pad), (pad, pad)],
            dimension_numbers=("NHWC", "HWIO", "NHWC"))
    return p.reshape(n * ho * wo, kh * kw * c), (n, ho, wo)


def fold_conv_bn(w_oihw, conv_b, gamma, beta, mean, var):
    """Fold eval-mode BN into the conv: weight columns scaled, folded bias."""
    cout, cin, kh, kw = w_oihw.shape
    # Channel-major K ordering to match extract_patches.
    w_mat = jnp.transpose(w_oihw, (1, 2, 3, 0)).reshape(cin * kh * kw, cout)
    scale = gamma / jnp.sqrt(var + EPS)
    return w_mat * scale[None, :], beta + (conv_b - mean) * scale


def resblk_forward(x_nchw, params, stride):
    x = jnp.transpose(x_nchw, (0, 2, 3, 1)).astype(jnp.float32)  # -> NHWC
    ch_in = x.shape[-1]
    ch_out = params["w1"].shape[0]
    x_bf16 = x.astype(jnp.bfloat16)

    # ---- branch 1: conv1 (3x3, stride) -> bn1 -> relu
    w1m, b1 = fold_conv_bn(params["w1"], params["b1"], params["g1"],
                           params["be1"], params["m1"], params["v1"])
    p1, (n, ho, wo) = extract_patches(x_bf16, 3, 3, stride, 1)
    out1 = fused_conv_bn(p1, w1m, b1, relu=True, out_dtype=jnp.bfloat16)
    out1_nhwc = out1.reshape(n, ho, wo, ch_out)

    # ---- branch 2: conv2 (3x3, stride 1) -> bn2, + shortcut, relu
    w2m, b2 = fold_conv_bn(params["w2"], params["b2"], params["g2"],
                           params["be2"], params["m2"], params["v2"])
    p2, _ = extract_patches(out1_nhwc, 3, 3, 1, 1)

    if ch_out != ch_in:
        # Projection shortcut (1x1 conv stride s -> bn) fused into the conv2
        # pallas_call as a second matmul; biases of both branches combined.
        wem, beb = fold_conv_bn(params["we"], params["be_b"], params["ge"],
                                params["bee"], params["me"], params["ve"])
        pe, _ = extract_patches(x_bf16, 1, 1, stride, 0)
        out = fused_conv_bn(p2, w2m, b2 + beb, sc_patches=pe, sc_w=wem,
                            relu=True)
    else:
        # PyTorch identity shortcut (empty nn.Sequential): only shape-valid
        # when stride == 1, exactly as in the original module.
        assert stride == 1, "identity shortcut requires stride == 1"
        shortcut = x_bf16.reshape(-1, ch_out)        # bf16 residual stream
        out = fused_conv_bn(p2, w2m, b2, residual=shortcut, relu=True)

    out_nhwc = out.reshape(n, ho, wo, ch_out)
    return jnp.transpose(out_nhwc, (0, 3, 1, 2))  # -> NCHW


# ---------------------------------------------------------------------------
# Pure-JAX reference (lax.conv) for correctness checking.
# ---------------------------------------------------------------------------
def _ref_conv(x, w, b, stride, pad):
    y = lax.conv_general_dilated(
        x, w, (stride, stride), [(pad, pad), (pad, pad)],
        dimension_numbers=("NCHW", "OIHW", "NCHW"))
    return y + b[None, :, None, None]


def _ref_bn(y, g, be, m, v):
    return ((y - m[None, :, None, None]) /
            jnp.sqrt(v[None, :, None, None] + EPS) *
            g[None, :, None, None] + be[None, :, None, None])


def resblk_reference(x, params, stride):
    out = jax.nn.relu(_ref_bn(_ref_conv(x, params["w1"], params["b1"],
                                        stride, 1),
                              params["g1"], params["be1"],
                              params["m1"], params["v1"]))
    out = _ref_bn(_ref_conv(out, params["w2"], params["b2"], 1, 1),
                  params["g2"], params["be2"], params["m2"], params["v2"])
    if params["w1"].shape[0] != x.shape[1]:
        sc = _ref_bn(_ref_conv(x, params["we"], params["be_b"], stride, 0),
                     params["ge"], params["bee"], params["me"], params["ve"])
    else:
        sc = x
    return jax.nn.relu(out + sc)


# ---------------------------------------------------------------------------
def make_params(key, ch_in, ch_out):
    ks = jax.random.split(key, 16)
    p = {
        "w1": 0.1 * jax.random.normal(ks[0], (ch_out, ch_in, 3, 3), jnp.float32),
        "b1": 0.1 * jax.random.normal(ks[1], (ch_out,), jnp.float32),
        "g1": 1.0 + 0.1 * jax.random.normal(ks[2], (ch_out,), jnp.float32),
        "be1": 0.1 * jax.random.normal(ks[3], (ch_out,), jnp.float32),
        "m1": 0.1 * jax.random.normal(ks[4], (ch_out,), jnp.float32),
        "v1": 1.0 + 0.1 * jax.random.uniform(ks[5], (ch_out,), jnp.float32),
        "w2": 0.1 * jax.random.normal(ks[6], (ch_out, ch_out, 3, 3), jnp.float32),
        "b2": 0.1 * jax.random.normal(ks[7], (ch_out,), jnp.float32),
        "g2": 1.0 + 0.1 * jax.random.normal(ks[8], (ch_out,), jnp.float32),
        "be2": 0.1 * jax.random.normal(ks[9], (ch_out,), jnp.float32),
        "m2": 0.1 * jax.random.normal(ks[10], (ch_out,), jnp.float32),
        "v2": 1.0 + 0.1 * jax.random.uniform(ks[11], (ch_out,), jnp.float32),
    }
    if ch_out != ch_in:
        p.update({
            "we": 0.1 * jax.random.normal(ks[12], (ch_out, ch_in, 1, 1),
                                          jnp.float32),
            "be_b": 0.1 * jax.random.normal(ks[13], (ch_out,), jnp.float32),
            "ge": 1.0 + 0.1 * jax.random.normal(ks[14], (ch_out,), jnp.float32),
            "bee": 0.1 * jax.random.normal(ks[15], (ch_out,), jnp.float32),
            "me": 0.05 * jnp.ones((ch_out,), jnp.float32),
            "ve": 1.2 * jnp.ones((ch_out,), jnp.float32),
        })
    return p


def _run_case(key, batch, ch_in, ch_out, spatial, stride):
    kx, kp = jax.random.split(key)
    x = jax.random.normal(kx, (batch, ch_in, spatial, spatial), jnp.float32)
    params = make_params(kp, ch_in, ch_out)

    fwd = jax.jit(resblk_forward, static_argnums=2)
    out = jax.block_until_ready(fwd(x, params, stride))
    ref = jax.block_until_ready(resblk_reference(x, params, stride))

    assert out.shape == ref.shape == (batch, ch_out, spatial // stride,
                                      spatial // stride)
    # bf16 MXU inputs (f32 accumulate) -> loosened tolerance vs f32 reference.
    assert jnp.allclose(out, ref, atol=5e-2, rtol=5e-2), (
        float(jnp.max(jnp.abs(out - ref))))


if __name__ == "__main__":
    key = jax.random.PRNGKey(0)
    k1, k2 = jax.random.split(key)

    # Projection-shortcut path (ch_out != ch_in, stride 2): fused 1x1 shortcut.
    _run_case(k1, batch=2, ch_in=4, ch_out=8, spatial=16, stride=2)
    # Identity-shortcut path (ch_out == ch_in, stride 1): bf16 residual stream.
    _run_case(k2, batch=2, ch_in=8, ch_out=8, spatial=16, stride=1)

    print("KERNEL_OK")
</pallas_src>

<mosaic_0001>
module attributes {stable_mosaic.version = 11 : i64} {
  func.func @_mm_bias_kernel(%arg0: i32, %arg1: i32, %arg2: memref<128x36xbf16, #tpu.memory_space<vmem>>, %arg3: memref<36x128xbf16, #tpu.memory_space<vmem>>, %arg4: memref<1x128xf32, #tpu.memory_space<vmem>>, %arg5: memref<128x128xbf16, #tpu.memory_space<vmem>>) attributes {dimension_semantics = [#tpu.dimension_semantics<parallel>, #tpu.dimension_semantics<parallel>], iteration_bounds = array<i64: 1, 1>, scalar_prefetch = 0 : i64, scratch_operands = 0 : i64, tpu.core_type = #tpu.core_type<tc>, window_params = [{transform_indices = @transform_0, window_bounds = array<i64: 128, 36>}, {transform_indices = @transform_1, window_bounds = array<i64: 36, 128>}, {transform_indices = @transform_2, window_bounds = array<i64: 1, 128>}, {transform_indices = @transform_3, window_bounds = array<i64: 128, 128>}]} {
    %c0 = arith.constant 0 : index
    %c0_0 = arith.constant 0 : index
    %0 = vector.load %arg2[%c0, %c0_0] : memref<128x36xbf16, #tpu.memory_space<vmem>>, vector<128x36xbf16>
    %c0_1 = arith.constant 0 : index
    %c0_2 = arith.constant 0 : index
    %1 = vector.load %arg3[%c0_1, %c0_2] : memref<36x128xbf16, #tpu.memory_space<vmem>>, vector<36x128xbf16>
    %cst = arith.constant dense<0.000000e+00> : vector<128x128xf32>
    %2 = tpu.matmul %0, %1, %cst {dimension_numbers = #tpu.dot_dimension_numbers<[1], [0], [0], [1], [0, 0, 1, 1], [], []>} : vector<128x36xbf16>, vector<36x128xbf16>, vector<128x128xf32> -> vector<128x128xf32>
    %c0_3 = arith.constant 0 : index
    %c0_4 = arith.constant 0 : index
    %3 = vector.load %arg4[%c0_3, %c0_4] : memref<1x128xf32, #tpu.memory_space<vmem>>, vector<1x128xf32>
    %4 = vector.broadcast %3 : vector<1x128xf32> to vector<128x128xf32>
    %5 = arith.addf %2, %4 : vector<128x128xf32>
    %cst_5 = arith.constant 0.000000e+00 : f32
    %6 = vector.broadcast %cst_5 : f32 to vector<128x128xf32>
    %7 = arith.maximumf %5, %6 : vector<128x128xf32>
    %8 = arith.truncf %7 : vector<128x128xf32> to vector<128x128xbf16>
    %c0_6 = arith.constant 0 : index
    %c0_7 = arith.constant 0 : index
    %9 = vector.load %arg5[%c0_6, %c0_7] : memref<128x128xbf16, #tpu.memory_space<vmem>>, vector<128x128xbf16>
    tpu.vector_store %arg5[%c0_6, %c0_7], %8 {strides = array<i32>} : memref<128x128xbf16, #tpu.memory_space<vmem>>, vector<128x128xbf16>,
    return
  }
  func.func @transform_0(%arg0: i32, %arg1: i32) -> (i32, i32) {
    %c0_i32 = arith.constant 0 : i32
    %c0_i32_0 = arith.constant 0 : i32
    return %arg1, %c0_i32 : i32, i32
  }
  func.func @transform_1(%arg0: i32, %arg1: i32) -> (i32, i32) {
    %c0_i32 = arith.constant 0 : i32
    %c0_i32_0 = arith.constant 0 : i32
    return %c0_i32, %arg0 : i32, i32
  }
  func.func @transform_2(%arg0: i32, %arg1: i32) -> (i32, i32) {
    %c0_i32 = arith.constant 0 : i32
    %c0_i32_0 = arith.constant 0 : i32
    return %c0_i32, %arg0 : i32, i32
  }
  func.func @transform_3(%arg0: i32, %arg1: i32) -> (i32, i32) {
    %c0_i32 = arith.constant 0 : i32
    return %arg1, %arg0 : i32, i32
  }
}

module attributes {stable_mosaic.version = 11 : i64} {
  func.func @_mm2_bias_kernel(%arg0: i32, %arg1: i32, %arg2: memref<128x72xbf16, #tpu.memory_space<vmem>>, %arg3: memref<72x128xbf16, #tpu.memory_space<vmem>>, %arg4: memref<128x4xbf16, #tpu.memory_space<vmem>>, %arg5: memref<4x128xbf16, #tpu.memory_space<vmem>>, %arg6: memref<1x128xf32, #tpu.memory_space<vmem>>, %arg7: memref<128x128xf32, #tpu.memory_space<vmem>>) attributes {dimension_semantics = [#tpu.dimension_semantics<parallel>, #tpu.dimension_semantics<parallel>], iteration_bounds = array<i64: 1, 1>, scalar_prefetch = 0 : i64, scratch_operands = 0 : i64, tpu.core_type = #tpu.core_type<tc>, window_params = [{transform_indices = @transform_0, window_bounds = array<i64: 128, 72>}, {transform_indices = @transform_1, window_bounds = array<i64: 72, 128>}, {transform_indices = @transform_2, window_bounds = array<i64: 128, 4>}, {transform_indices = @transform_3, window_bounds = array<i64: 4, 128>}, {transform_indices = @transform_4, window_bounds = array<i64: 1, 128>}, {transform_indices = @transform_5, window_bounds = array<i64: 128, 128>}]} {
    %c0 = arith.constant 0 : index
    %c0_0 = arith.constant 0 : index
    %0 = vector.load %arg2[%c0, %c0_0] : memref<128x72xbf16, #tpu.memory_space<vmem>>, vector<128x72xbf16>
    %c0_1 = arith.constant 0 : index
    %c0_2 = arith.constant 0 : index
    %1 = vector.load %arg3[%c0_1, %c0_2] : memref<72x128xbf16, #tpu.memory_space<vmem>>, vector<72x128xbf16>
    %cst = arith.constant dense<0.000000e+00> : vector<128x128xf32>
    %2 = tpu.matmul %0, %1, %cst {dimension_numbers = #tpu.dot_dimension_numbers<[1], [0], [0], [1], [0, 0, 1, 1], [], []>} : vector<128x72xbf16>, vector<72x128xbf16>, vector<128x128xf32> -> vector<128x128xf32>
    %c0_3 = arith.constant 0 : index
    %c0_4 = arith.constant 0 : index
    %3 = vector.load %arg4[%c0_3, %c0_4] : memref<128x4xbf16, #tpu.memory_space<vmem>>, vector<128x4xbf16>
    %c0_5 = arith.constant 0 : index
    %c0_6 = arith.constant 0 : index
    %4 = vector.load %arg5[%c0_5, %c0_6] : memref<4x128xbf16, #tpu.memory_space<vmem>>, vector<4x128xbf16>
    %cst_7 = arith.constant dense<0.000000e+00> : vector<128x128xf32>
    %5 = tpu.matmul %3, %4, %cst_7 {dimension_numbers = #tpu.dot_dimension_numbers<[1], [0], [0], [1], [0, 0, 1, 1], [], []>} : vector<128x4xbf16>, vector<4x128xbf16>, vector<128x128xf32> -> vector<128x128xf32>
    %6 = arith.addf %2, %5 : vector<128x128xf32>
    %c0_8 = arith.constant 0 : index
    %c0_9 = arith.constant 0 : index
    %7 = vector.load %arg6[%c0_8, %c0_9] : memref<1x128xf32, #tpu.memory_space<vmem>>, vector<1x128xf32>
    %8 = vector.broadcast %7 : vector<1x128xf32> to vector<128x128xf32>
    %9 = arith.addf %6, %8 : vector<128x128xf32>
    %cst_10 = arith.constant 0.000000e+00 : f32
    %10 = vector.broadcast %cst_10 : f32 to vector<128x128xf32>
    %11 = arith.maximumf %9, %10 : vector<128x128xf32>
    %c0_11 = arith.constant 0 : index
    %c0_12 = arith.constant 0 : index
    %12 = vector.load %arg7[%c0_11, %c0_12] : memref<128x128xf32, #tpu.memory_space<vmem>>, vector<128x128xf32>
    tpu.vector_store %arg7[%c0_11, %c0_12], %11 {strides = array<i32>} : memref<128x128xf32, #tpu.memory_space<vmem>>, vector<128x128xf32>,
    return
  }
  func.func @transform_0(%arg0: i32, %arg1: i32) -> (i32, i32) {
    %c0_i32 = arith.constant 0 : i32
    %c0_i32_0 = arith.constant 0 : i32
    return %arg1, %c0_i32 : i32, i32
  }
  func.func @transform_1(%arg0: i32, %arg1: i32) -> (i32, i32) {
    %c0_i32 = arith.constant 0 : i32
    %c0_i32_0 = arith.constant 0 : i32
    return %c0_i32, %arg0 : i32, i32
  }
  func.func @transform_2(%arg0: i32, %arg1: i32) -> (i32, i32) {
    %c0_i32 = arith.constant 0 : i32
    %c0_i32_0 = arith.constant 0 : i32
    return %arg1, %c0_i32 : i32, i32
  }
  func.func @transform_3(%arg0: i32, %arg1: i32) -> (i32, i32) {
    %c0_i32 = arith.constant 0 : i32
    %c0_i32_0 = arith.constant 0 : i32
    return %c0_i32, %arg0 : i32, i32
  }
  func.func @transform_4(%arg0: i32, %arg1: i32) -> (i32, i32) {
    %c0_i32 = arith.constant 0 : i32
    %c0_i32_0 = arith.constant 0 : i32
    return %c0_i32, %arg0 : i32, i32
  }
  func.func @transform_5(%arg0: i32, %arg1: i32) -> (i32, i32) {
    %c0_i32 = arith.constant 0 : i32
    return %arg1, %arg0 : i32, i32
  }
}

</mosaic_0001>

<bundles_post_ra>
// kernel: resblk_forward.2
= control target key start
LH: loop header
LB: loop body
LE: loop exit
PB: predicated region body
PF: predicated region fallthrough
CT: control target
= control target key end

     0   :  { %vm120_vm0 = vcmask 1041408   ;;  %vm95_vm1 = vcmask 293888   ;;  %s428_s1 = inlined_call_operand.vmem [shape: bf16[36,128], index: 1, kind: input, shape index: {}]   ;;  %s429_s2 = inlined_call_operand.vmem [shape: f32[1,128], index: 2, kind: input, shape index: {}]   ;;  %s430_s0 = inlined_call_operand.vmem [shape: bf16[128,36], index: 0, kind: input, shape index: {}]   ;;  %s431_s3 = inlined_call_operand.vmem [shape: bf16[128,128], index: 3, kind: output, shape index: {}]  }
   0x1   :  { %v35_v0 = vld [vmem:[%s428_s1 + $0x10] sm:$0x3]  ;;  %v282_v4 = vld [vmem:[%s428_s1 + $0x8] sm:$0xff]  ;;  %v281_v5 = vld [vmem:[%s428_s1] sm:$0xff] }
   0x2   :  { %v89_v1 = vunpack.c.l.b16 %v35_v0  ;;  %v273_v6 = vld [vmem:[%s430_s0] sm:$0xff]  ;;  %v275_v7 = vld [vmem:[%s430_s0 + $0x10] sm:$0xff]  ;;  %v274_v10 = vld [vmem:[%s430_s0 + $0x8] sm:$0xff] }
   0x3   :  { %v277_v8 = vld [vmem:[%s430_s0 + $0x20] sm:$0xff]  ;;  %v279_v9 = vld [vmem:[%s430_s0 + $0x30] sm:$0xff]  ;;  %v276_v11 = vld [vmem:[%s430_s0 + $0x18] sm:$0xff] }
   0x4   :  { %v92_v2 = vpack.c.b16 %v89_v1, %v89_v1  ;;  %v278_v12 = vld [vmem:[%s430_s0 + $0x28] sm:$0xff]  ;;  %v280_v13 = vld [vmem:[%s430_s0 + $0x38] sm:$0xff]  ;;  %v339_v16 = vld [vmem:[%s429_s2] ss:$0 sm:$0xff] }
   0x6   :  { %v122_v3 = vsel %vm120_vm0, %v92_v2, 0 }
   0x7   :  { %129 = vmatpush.bf16.msra.mxu0 %v122_v3  ;;  %330 = vmatpush.bf16.msra.mxu1 %v122_v3 }
   0x8   :  { %331 = vmatpush.bf16.msra.mxu2 %v122_v3  ;;  %332 = vmatpush.bf16.msra.mxu3 %v122_v3 }
   0xb   :  { %130 = vmatpush.bf16.msra.mxu0 %v282_v4  ;;  %333 = vmatpush.bf16.msra.mxu1 %v282_v4 }
   0xc   :  { %334 = vmatpush.bf16.msra.mxu2 %v282_v4  ;;  %335 = vmatpush.bf16.msra.mxu3 %v282_v4 }
   0xf   :  { %131 = vmatpush.bf16.msra.mxu0 %v281_v5  ;;  %336 = vmatpush.bf16.msra.mxu1 %v281_v5 }
  0x10   :  { %337 = vmatpush.bf16.msra.mxu2 %v281_v5  ;;  %338 = vmatpush.bf16.msra.mxu3 %v281_v5 }
  0x12   :  { %265 = vmatmul.msk.bf16.vlgmr.msra.gmra.mxu0 %vm95_vm1, %v273_v6  ;;  %267 = vmatmul.msk.bf16.vlgmr.msra.gmra.mxu1 %vm95_vm1, %v275_v7 }
  0x13   :  { %269 = vmatmul.msk.bf16.vlgmr.msra.gmra.mxu2 %vm95_vm1, %v277_v8  ;;  %271 = vmatmul.msk.bf16.vlgmr.msra.gmra.mxu3 %vm95_vm1, %v279_v9 }
  0x22   :  { %266 = vmatmul.msk.bf16.gmra.mxu0 %vm95_vm1, %v274_v10  ;;  %268 = vmatmul.msk.bf16.gmra.mxu1 %vm95_vm1, %v276_v11 }
  0x23   :  { %270 = vmatmul.msk.bf16.gmra.mxu2 %vm95_vm1, %v278_v12  ;;  %272 = vmatmul.msk.bf16.gmra.mxu3 %vm95_vm1, %v280_v13 }
  0x8f   :  { %v133_v14 = vpop.f32.mrf.mxu0  ;;  %v143_v15 = vpop.f32.mrf.mxu1 }
  0x90   :  { %v134_v17 = vadd.f32 %v339_v16, %v133_v14  ;;  %v144_v18 = vadd.f32 %v339_v16, %v143_v15 }
  0x92   :  { %v173_v25 = vmax.f32 %v134_v17, 0.0  ;;  %v177_v26 = vmax.f32 %v144_v18, 0.0 }
  0x96   :  { %v153_v19 = vpop.f32.mrf.mxu2  ;;  %v163_v20 = vpop.f32.mrf.mxu3 }
  0x97   :  { %v135_v21 = vpop.f32.mrf.mxu0  ;;  %v145_v22 = vpop.f32.mrf.mxu1  ;;  %v154_v31 = vadd.f32 %v339_v16, %v153_v19  ;;  %v164_v32 = vadd.f32 %v339_v16, %v163_v20 }
  0x98   :  { %v136_v23 = vadd.f32 %v339_v16, %v135_v21  ;;  %v146_v24 = vadd.f32 %v339_v16, %v145_v22 }
  0x99   :  { %v181_v39 = vmax.f32 %v154_v31, 0.0  ;;  %v185_v40 = vmax.f32 %v164_v32, 0.0 }
  0x9a   :  { %v174_v27 = vmax.f32 %v136_v23, 0.0  ;;  %v178_v28 = vmax.f32 %v146_v24, 0.0 }
  0x9c   :  { %v286_v29 = vpack.c.bf16 %v174_v27, %v173_v25  ;;  %v296_v30 = vpack.c.bf16 %v178_v28, %v177_v26 }
  0x9e   :  { %287 = vst [vmem:[%s431_s3] sm:$0xff] %v286_v29   ;;  %v155_v33 = vpop.f32.mrf.mxu2  ;;  %v165_v34 = vpop.f32.mrf.mxu3 }
  0x9f   :  { %324 = vst [vmem:[%s431_s3 + $0x10] sm:$0xff] %v296_v30   ;;  %v156_v35 = vadd.f32 %v339_v16, %v155_v33  ;;  %v166_v36 = vadd.f32 %v339_v16, %v165_v34  ;;  %v138_v37 = vpop.f32.mrf.mxu0  ;;  %v148_v38 = vpop.f32.mrf.mxu1 }
  0xa0   :  { %v139_v45 = vadd.f32 %v339_v16, %v138_v37  ;;  %v149_v46 = vadd.f32 %v339_v16, %v148_v38 }
  0xa1   :  { %v182_v41 = vmax.f32 %v156_v35, 0.0  ;;  %v186_v42 = vmax.f32 %v166_v36, 0.0 }
  0xa2   :  { %v175_v53 = vmax.f32 %v139_v45, 0.0  ;;  %v179_v54 = vmax.f32 %v149_v46, 0.0 }
  0xa3   :  { %v306_v43 = vpack.c.bf16 %v182_v41, %v181_v39  ;;  %v316_v44 = vpack.c.bf16 %v186_v42, %v185_v40 }
  0xa5   :  { %326 = vst [vmem:[%s431_s3 + $0x20] sm:$0xff] %v306_v43  }
  0xa6   :  { %328 = vst [vmem:[%s431_s3 + $0x30] sm:$0xff] %v316_v44   ;;  %v158_v47 = vpop.f32.mrf.mxu2  ;;  %v168_v48 = vpop.f32.mrf.mxu3 }
  0xa7   :  { %v140_v49 = vpop.f32.mrf.mxu0  ;;  %v150_v50 = vpop.f32.mrf.mxu1  ;;  %v159_v59 = vadd.f32 %v339_v16, %v158_v47  ;;  %v169_v60 = vadd.f32 %v339_v16, %v168_v48 }
  0xa8   :  { %v141_v51 = vadd.f32 %v339_v16, %v140_v49  ;;  %v151_v52 = vadd.f32 %v339_v16, %v150_v50 }
  0xa9   :  { %v183_v1 = vmax.f32 %v159_v59, 0.0  ;;  %v187_v2 = vmax.f32 %v169_v60, 0.0 }
  0xaa   :  { %v176_v55 = vmax.f32 %v141_v51, 0.0  ;;  %v180_v56 = vmax.f32 %v151_v52, 0.0 }
  0xac   :  { %v291_v57 = vpack.c.bf16 %v176_v55, %v175_v53  ;;  %v301_v58 = vpack.c.bf16 %v180_v56, %v179_v54 }
  0xae   :  { %323 = vst [vmem:[%s431_s3 + $0x8] sm:$0xff] %v291_v57   ;;  %v160_v61 = vpop.f32.mrf.mxu2  ;;  %v170_v62 = vpop.f32.mrf.mxu3 }
  0xaf   :  { %325 = vst [vmem:[%s431_s3 + $0x18] sm:$0xff] %v301_v58   ;;  %v161_v63 = vadd.f32 %v339_v16, %v160_v61  ;;  %v171_v0 = vadd.f32 %v339_v16, %v170_v62 }
  0xb1   :  { %v184_v3 = vmax.f32 %v161_v63, 0.0  ;;  %v188_v4 = vmax.f32 %v171_v0, 0.0 }
  0xb3   :  { %v311_v5 = vpack.c.bf16 %v184_v3, %v183_v1  ;;  %v321_v6 = vpack.c.bf16 %v188_v4, %v187_v2 }
  0xb5   :  { %327 = vst [vmem:[%s431_s3 + $0x28] sm:$0xff] %v311_v5  }
  0xb6   :  { %329 = vst [vmem:[%s431_s3 + $0x38] sm:$0xff] %v321_v6  }

// kernel: resblk_forward.3
= control target key start
LH: loop header
LB: loop body
LE: loop exit
PB: predicated region body
PF: predicated region fallthrough
CT: control target
= control target key end

     0   :  { %vm128_vm0 = vcmask 1041408   ;;  %vm103_vm1 = vcmask 31744   ;;  %vm273_vm2 = vcmask 1043456   ;;  %vm248_vm3 = vcmask 588800   ;;  %s686_s3 = inlined_call_operand.vmem [shape: bf16[4,128], index: 3, kind: input, shape index: {}]   ;;  %s687_s2 = inlined_call_operand.vmem [shape: bf16[128,4], index: 2, kind: input, shape index: {}]   ;;  %s688_s1 = inlined_call_operand.vmem [shape: bf16[72,128], index: 1, kind: input, shape index: {}]   ;;  %s689_s0 = inlined_call_operand.vmem [shape: bf16[128,72], index: 0, kind: input, shape index: {}]   ;;  %s690_s4 = inlined_call_operand.vmem [shape: f32[1,128], index: 4, kind: input, shape index: {}]   ;;  %s691_s5 = inlined_call_operand.vmem [shape: f32[128,128], index: 5, kind: output, shape index: {}]  }
   0x1   :  { %v62_v0 = vld [vmem:[%s686_s3] sm:$0x3]  ;;  %v495_v6 = vld [vmem:[%s687_s2 + $0x28] sm:$0xff]  ;;  %v489_v8 = vld [vmem:[%s688_s1 + $0x18] sm:$0xff] }
   0x2   :  { %v45_v1 = vld [vmem:[%s688_s1 + $0x20] sm:$0xf]  ;;  %v130_v2 = vsel %vm128_vm0, %v62_v0, 0  ;;  %v488_v9 = vld [vmem:[%s688_s1 + $0x10] sm:$0xff]  ;;  %v487_v10 = vld [vmem:[%s688_s1 + $0x8] sm:$0xff] }
   0x3   :  { %v490_v3 = vld [vmem:[%s687_s2] sm:$0xff]  ;;  %v238_v4 = vunpack.c.l.b16 %v45_v1  ;;  %139 = vmatpush.bf16.msra.mxu0 %v130_v2  ;;  %498 = vmatpush.bf16.msra.mxu3 %v130_v2  ;;  %v491_v11 = vld [vmem:[%s687_s2 + $0x8] sm:$0xff]  ;;  %v496_v12 = vld [vmem:[%s687_s2 + $0x30] sm:$0xff] }
   0x4   :  { %v486_v13 = vld [vmem:[%s688_s1] sm:$0xff]  ;;  %v492_v16 = vld [vmem:[%s687_s2 + $0x10] sm:$0xff]  ;;  %v497_v17 = vld [vmem:[%s687_s2 + $0x38] sm:$0xff] }
   0x5   :  { %v243_v5 = vpack.c.b16 %v238_v4, %v238_v4  ;;  %v478_v14 = vld [vmem:[%s689_s0] sm:$0xff]  ;;  %v479_v18 = vld [vmem:[%s689_s0 + $0x8] sm:$0xff]  ;;  %v493_v20 = vld [vmem:[%s687_s2 + $0x18] sm:$0xff] }
   0x6   :  { %414 = vmatmul.msk.bf16.vlgmr.msra.gmra.mxu0 %vm103_vm1, %v490_v3  ;;  %419 = vmatmul.msk.bf16.vlgmr.msra.gmra.mxu3 %vm103_vm1, %v495_v6  ;;  %v482_v15 = vld [vmem:[%s689_s0 + $0x20] sm:$0xff]  ;;  %v483_v19 = vld [vmem:[%s689_s0 + $0x28] sm:$0xff]  ;;  %v480_v21 = vld [vmem:[%s689_s0 + $0x10] sm:$0xff] }
   0x7   :  { %v275_v7 = vsel %vm273_vm2, %v243_v5, 0  ;;  %v484_v22 = vld [vmem:[%s689_s0 + $0x30] sm:$0xff]  ;;  %v494_v23 = vld [vmem:[%s687_s2 + $0x20] sm:$0xff]  ;;  %v481_v24 = vld [vmem:[%s689_s0 + $0x18] sm:$0xff] }
   0x8   :  { %280 = vmatpush.bf16.msra.mxu1 %v275_v7  ;;  %499 = vmatpush.bf16.msra.mxu2 %v275_v7  ;;  %v485_v25 = vld [vmem:[%s689_s0 + $0x38] sm:$0xff]  ;;  %v620_v29 = vld [vmem:[%s690_s4] ss:$0 sm:$0xff] }
   0xc   :  { %281 = vmatpush.bf16.msra.mxu1 %v489_v8  ;;  %500 = vmatpush.bf16.msra.mxu2 %v489_v8 }
  0x10   :  { %282 = vmatpush.bf16.msra.mxu1 %v488_v9  ;;  %501 = vmatpush.bf16.msra.mxu2 %v488_v9 }
  0x14   :  { %283 = vmatpush.bf16.msra.mxu1 %v487_v10  ;;  %502 = vmatpush.bf16.msra.mxu2 %v487_v10 }
  0x16   :  { %415 = vmatmul.msk.bf16.gmra.mxu0 %vm103_vm1, %v491_v11  ;;  %420 = vmatmul.msk.bf16.gmra.mxu3 %vm103_vm1, %v496_v12 }
  0x18   :  { %284 = vmatpush.bf16.msra.mxu1 %v486_v13  ;;  %503 = vmatpush.bf16.msra.mxu2 %v486_v13 }
  0x1b   :  { %470 = vmatmul.msk.bf16.vlgmr.msra.gmra.mxu1 %vm248_vm3, %v478_v14  ;;  %474 = vmatmul.msk.bf16.vlgmr.msra.gmra.mxu2 %vm248_vm3, %v482_v15 }
  0x26   :  { %416 = vmatmul.msk.bf16.gmra.mxu0 %vm103_vm1, %v492_v16  ;;  %421 = vmatmul.msk.bf16.gmra.mxu3 %vm103_vm1, %v497_v17 }
  0x2b   :  { %471 = vmatmul.msk.bf16.gmra.mxu1 %vm248_vm3, %v479_v18  ;;  %475 = vmatmul.msk.bf16.gmra.mxu2 %vm248_vm3, %v483_v19 }
  0x36   :  { %417 = vmatmul.msk.bf16.gmra.mxu0 %vm103_vm1, %v493_v20 }
  0x3b   :  { %472 = vmatmul.msk.bf16.gmra.mxu1 %vm248_vm3, %v480_v21  ;;  %476 = vmatmul.msk.bf16.gmra.mxu2 %vm248_vm3, %v484_v22 }
  0x46   :  { %418 = vmatmul.msk.bf16.gmra.mxu0 %vm103_vm1, %v494_v23 }
  0x4b   :  { %473 = vmatmul.msk.bf16.gmra.mxu1 %vm248_vm3, %v481_v24  ;;  %477 = vmatmul.msk.bf16.gmra.mxu2 %vm248_vm3, %v485_v25 }
  0x83   :  { %v141_v26 = vpop.f32.mrf.mxu0 }
  0x89   :  { %v166_v40 = vpop.f32.mrf.mxu3 }
  0x8b   :  { %v143_v27 = vpop.f32.mrf.mxu0 }
  0x91   :  { %v168_v48 = vpop.f32.mrf.mxu3 }
  0x93   :  { %v146_v28 = vpop.f32.mrf.mxu0 }
  0x98   :  { %v286_v30 = vpop.f32.mrf.mxu1 }
  0x99   :  { %v287_v31 = vadd.f32 %v286_v30, %v141_v26  ;;  %v171_v60 = vpop.f32.mrf.mxu3 }
  0x9b   :  { %v330_v32 = vadd.f32 %v620_v29, %v287_v31  ;;  %v148_v33 = vpop.f32.mrf.mxu0 }
  0x9d   :  { %v346_v34 = vmax.f32 %v330_v32, 0.0 }
  0x9e   :  { %v306_v35 = vpop.f32.mrf.mxu2 }
  0x9f   :  { %362 = vst [vmem:[%s691_s5] sm:$0xff] %v346_v34 }
  0xa0   :  { %v288_v36 = vpop.f32.mrf.mxu1 }
  0xa1   :  { %v289_v37 = vadd.f32 %v288_v36, %v143_v27  ;;  %v173_v9 = vpop.f32.mrf.mxu3 }
  0xa3   :  { %v331_v38 = vadd.f32 %v620_v29, %v289_v37  ;;  %v151_v39 = vpop.f32.mrf.mxu0 }
  0xa5   :  { %v347_v41 = vmax.f32 %v331_v38, 0.0 }
  0xa6   :  { %v308_v42 = vpop.f32.mrf.mxu2 }
  0xa7   :  { %363 = vst [vmem:[%s691_s5 + $0x8] sm:$0xff] %v347_v41 }
  0xa8   :  { %v291_v43 = vpop.f32.mrf.mxu1 }
  0xa9   :  { %v292_v44 = vadd.f32 %v291_v43, %v146_v28  ;;  %v176_v24 = vpop.f32.mrf.mxu3 }
  0xab   :  { %v332_v45 = vadd.f32 %v620_v29, %v292_v44  ;;  %v153_v46 = vpop.f32.mrf.mxu0 }
  0xad   :  { %v348_v47 = vmax.f32 %v332_v45, 0.0 }
  0xae   :  { %v311_v49 = vpop.f32.mrf.mxu2 }
  0xaf   :  { %364 = vst [vmem:[%s691_s5 + $0x10] sm:$0xff] %v348_v47  ;;  %v312_v50 = vadd.f32 %v311_v49, %v166_v40 }
  0xb0   :  { %v293_v51 = vpop.f32.mrf.mxu1 }
  0xb1   :  { %v340_v52 = vadd.f32 %v620_v29, %v312_v50  ;;  %v294_v53 = vadd.f32 %v293_v51, %v148_v33 }
  0xb3   :  { %v356_v54 = vmax.f32 %v340_v52, 0.0  ;;  %v333_v55 = vadd.f32 %v620_v29, %v294_v53  ;;  %v156_v56 = vpop.f32.mrf.mxu0 }
  0xb5   :  { %372 = vst [vmem:[%s691_s5 + $0x50] sm:$0xff] %v356_v54  ;;  %v349_v57 = vmax.f32 %v333_v55, 0.0 }
  0xb6   :  { %v313_v58 = vpop.f32.mrf.mxu2 }
  0xb7   :  { %365 = vst [vmem:[%s691_s5 + $0x18] sm:$0xff] %v349_v57  ;;  %v314_v59 = vadd.f32 %v313_v58, %v168_v48 }
  0xb8   :  { %v296_v61 = vpop.f32.mrf.mxu1 }
  0xb9   :  { %v341_v62 = vadd.f32 %v620_v29, %v314_v59  ;;  %v297_v63 = vadd.f32 %v296_v61, %v151_v39  ;;  %v178_v39 = vpop.f32.mrf.mxu3 }
  0xbb   :  { %v357_v0 = vmax.f32 %v341_v62, 0.0  ;;  %v334_v1 = vadd.f32 %v620_v29, %v297_v63  ;;  %v158_v2 = vpop.f32.mrf.mxu0 }
  0xbd   :  { %373 = vst [vmem:[%s691_s5 + $0x58] sm:$0xff] %v357_v0  ;;  %v350_v3 = vmax.f32 %v334_v1, 0.0 }
  0xbe   :  { %v316_v4 = vpop.f32.mrf.mxu2 }
  0xbf   :  { %366 = vst [vmem:[%s691_s5 + $0x20] sm:$0xff] %v350_v3  ;;  %v317_v5 = vadd.f32 %v316_v4, %v171_v60 }
  0xc0   :  { %v298_v6 = vpop.f32.mrf.mxu1 }
  0xc1   :  { %v342_v7 = vadd.f32 %v620_v29, %v317_v5  ;;  %v299_v8 = vadd.f32 %v298_v6, %v153_v46 }
  0xc3   :  { %v358_v10 = vmax.f32 %v342_v7, 0.0  ;;  %v335_v11 = vadd.f32 %v620_v29, %v299_v8  ;;  %v161_v12 = vpop.f32.mrf.mxu0 }
  0xc4   :  { %v307_v14 = vadd.f32 %v306_v35, %v161_v12 }
  0xc5   :  { %374 = vst [vmem:[%s691_s5 + $0x60] sm:$0xff] %v358_v10  ;;  %v351_v13 = vmax.f32 %v335_v11, 0.0 }
  0xc6   :  { %v318_v15 = vpop.f32.mrf.mxu2  ;;  %v338_v16 = vadd.f32 %v620_v29, %v307_v14 }
  0xc7   :  { %367 = vst [vmem:[%s691_s5 + $0x28] sm:$0xff] %v351_v13  ;;  %v319_v17 = vadd.f32 %v318_v15, %v173_v9 }
  0xc8   :  { %v301_v18 = vpop.f32.mrf.mxu1  ;;  %v354_v19 = vmax.f32 %v338_v16, 0.0 }
  0xc9   :  { %v343_v20 = vadd.f32 %v620_v29, %v319_v17  ;;  %v302_v21 = vadd.f32 %v301_v18, %v156_v56 }
  0xca   :  { %370 = vst [vmem:[%s691_s5 + $0x40] sm:$0xff] %v354_v19 }
  0xcb   :  { %v359_v22 = vmax.f32 %v343_v20, 0.0  ;;  %v336_v23 = vadd.f32 %v620_v29, %v302_v21  ;;  %v163_v25 = vpop.f32.mrf.mxu0 }
  0xcc   :  { %v309_v27 = vadd.f32 %v308_v42, %v163_v25 }
  0xcd   :  { %375 = vst [vmem:[%s691_s5 + $0x68] sm:$0xff] %v359_v22  ;;  %v352_v26 = vmax.f32 %v336_v23, 0.0 }
  0xce   :  { %v321_v28 = vpop.f32.mrf.mxu2  ;;  %v339_v30 = vadd.f32 %v620_v29, %v309_v27 }
  0xcf   :  { %368 = vst [vmem:[%s691_s5 + $0x30] sm:$0xff] %v352_v26  ;;  %v322_v31 = vadd.f32 %v321_v28, %v176_v24 }
  0xd0   :  { %v303_v32 = vpop.f32.mrf.mxu1  ;;  %v355_v33 = vmax.f32 %v339_v30, 0.0 }
  0xd1   :  { %v344_v34 = vadd.f32 %v620_v29, %v322_v31  ;;  %v304_v35 = vadd.f32 %v303_v32, %v158_v2 }
  0xd2   :  { %371 = vst [vmem:[%s691_s5 + $0x48] sm:$0xff] %v355_v33 }
  0xd3   :  { %v360_v36 = vmax.f32 %v344_v34, 0.0  ;;  %v337_v37 = vadd.f32 %v620_v29, %v304_v35 }
  0xd5   :  { %376 = vst [vmem:[%s691_s5 + $0x70] sm:$0xff] %v360_v36  ;;  %v353_v38 = vmax.f32 %v337_v37, 0.0 }
  0xd6   :  { %v323_v40 = vpop.f32.mrf.mxu2 }
  0xd7   :  { %369 = vst [vmem:[%s691_s5 + $0x38] sm:$0xff] %v353_v38  ;;  %v324_v41 = vadd.f32 %v323_v40, %v178_v39 }
  0xd9   :  { %v345_v42 = vadd.f32 %v620_v29, %v324_v41 }
  0xdb   :  { %v361_v43 = vmax.f32 %v345_v42, 0.0 }
  0xdd   :  { %377 = vst [vmem:[%s691_s5 + $0x78] sm:$0xff] %v361_v43 }

</bundles_post_ra>
